<compile_context>
chip_gen: v7x
topology: tpu7x:2x2x1
jax: 0.10.0
libtpu: 0.0.40
codegen_flags: <defaults>
</compile_context>

<pallas_src>
import functools
import math

import jax
import jax.numpy as jnp
from jax import lax
from jax.experimental import pallas as pl
from jax.experimental.pallas import tpu as pltpu


_TARGET_BLOCK_BYTES = 2 * 1024 * 1024     # ~2 MiB of f32 per input block
_VMEM_LIMIT_BYTES = 48 * 1024 * 1024      # safe on v5e/v6e (128 MiB) and v7x (64 MiB)


def _write_partials(out_ref, h_sum, w_sum):
    """Write (h_sum, w_sum) into one lane-dense (1, 1, 128) output block."""
    lane_idx = lax.broadcasted_iota(jnp.int32, (1, 128), 1)
    out_ref[...] = jnp.where(
        lane_idx == 0, h_sum, jnp.where(lane_idx == 1, w_sum, 0.0)
    ).reshape(1, 1, 128)


def _tv_kernel_folded(x_ref, hmask_ref, out_ref, *, w, total_rows, ragged):
    """Lane-folded layout: each sublane row holds k consecutive plane-rows.

    x_ref:     (S, L) block, L = k*w, block starts on plane boundaries.
    hmask_ref: (S, L) f32 H-direction mask (zero on the first row of every
               plane).  Constant index_map -> DMA'd once, resident in VMEM.
    out_ref:   (1, 1, 128) partial sums: lane 0 = H term, lane 1 = W term.
    """
    x = x_ref[...].astype(jnp.float32)                      # (S, L)
    s, l = x.shape

    if ragged:  # static Python flag: only the last block can overrun the array
        lrow = lax.broadcasted_iota(jnp.int32, (s, 1), 0)
        valid = (pl.program_id(0) * s + lrow) < total_rows
        x = jnp.where(valid, x, 0.0)                        # kills OOB garbage

    # Lane-only masks are (1, L): recomputing them per step is ~1/S of the
    # per-element work (negligible), unlike the old full-block iota/div/mod.
    col = lax.broadcasted_iota(jnp.int32, (1, l), 1)
    w_mask = ((col % w) != 0).astype(jnp.float32)           # first col of each segment
    seg_ge1 = col >= w                                      # segment-0 selector

    # W direction: x[:, c] - x[:, c-1] within each w-wide segment.
    dw = (x - pltpu.roll(x, 1, 1)) * w_mask

    # H direction: previous plane-row is w lanes to the left (seg >= 1) or the
    # last segment of the previous sublane row (seg == 0).  hmask zeroes the
    # first row of every plane, which also kills all wrap-around terms.
    a = pltpu.roll(x, w, 1)
    x_hprev = jnp.where(seg_ge1, a, pltpu.roll(a, 1, 0))
    dh = (x - x_hprev) * hmask_ref[...]

    _write_partials(out_ref, jnp.sum(dh * dh), jnp.sum(dw * dw))


def _tv_kernel_rows(x_ref, out_ref, *, h, total_rows, ragged):
    """Unfolded row-tiled layout: one plane-row per sublane row, blocks are
    arbitrary row tiles of the flat (N*H, W) stack (no whole-plane requirement,
    so huge planes stay within the VMEM budget).  The H difference across a
    block boundary (inside a plane) is masked here and added back as a tiny
    seam correction in the wrapper."""
    x = x_ref[...].astype(jnp.float32)                      # (S, W)
    s, lane = x.shape
    lrow = lax.broadcasted_iota(jnp.int32, (s, 1), 0)
    grow = pl.program_id(0) * s + lrow                      # global row index

    if ragged:
        x = jnp.where(grow < total_rows, x, 0.0)

    col = lax.broadcasted_iota(jnp.int32, (1, lane), 1)
    w_mask = (col != 0).astype(jnp.float32)                 # (1, W): lane-only
    # Row-only H mask: drop the first row of every plane and the first row of
    # the block (its predecessor lives in the previous block -> seam).
    h_mask = ((grow % h != 0) & (lrow != 0)).astype(jnp.float32)   # (S, 1)

    dw = (x - pltpu.roll(x, 1, 1)) * w_mask
    dh = (x - pltpu.roll(x, 1, 0)) * h_mask

    _write_partials(out_ref, jnp.sum(dh * dh), jnp.sum(dw * dw))


def l_tv_loss(x, tv_loss_weight=1.0, eps=1e-6,
              target_block_bytes=_TARGET_BLOCK_BYTES):
    """Total-variation loss matching the PyTorch L_TV.forward semantics.

    x: (B, C, H, W) array (NCHW).  Returns a scalar float32.
    Note: count_h/count_w are zero for H==1 / W==1, exactly like the reference.
    `eps` is unused in the reference forward; kept only for API parity.
    """
    b, c, h, w = x.shape
    n = b * c
    count_h = (h - 1) * w
    count_w = h * (w - 1)

    # ---- choose layout: fold k plane-rows side by side so the lane width is a
    # multiple of 128 for small W; fall back to the unfolded row layout when
    # folding is impossible or would force oversized blocks.
    if w >= 128:
        k = 1
    else:
        k = 128 // math.gcd(w, 128)                 # k*w is a multiple of 128
        while k > 1 and (n * h) % k:                # folding must reshape cleanly
            k //= 2
        if k > 1:
            unit = (8 * k) // math.gcd(h, 8 * k)    # planes per minimal block
            if unit * h * w * 4 > 4 * target_block_bytes:
                k = 1                               # huge planes: row-tile instead
    lane = k * w

    common_params = pltpu.CompilerParams(
        dimension_semantics=("parallel",),          # per-block partials -> megacore-safe
        vmem_limit_bytes=_VMEM_LIMIT_BYTES,
    )

    if k > 1:
        # ---------------- lane-folded path: whole planes per block ----------
        unit = (8 * k) // math.gcd(h, 8 * k)
        plane_bytes = h * w * 4
        p = max(1, target_block_bytes // plane_bytes)
        p = max(unit, (p // unit) * unit)           # whole 8-row groups + whole planes
        if p >= n:
            p = n                                   # single full-array block
        num_blocks = -(-n // p)
        sub_rows = (p * h) // k
        total_rows = (n * h) // k
        ragged = num_blocks * p > n                 # last block overruns the array

        x2d = x.reshape(total_rows, lane)           # free row-major reshape

        # H-direction mask: zero on the first row of every plane.  Blocks start
        # on plane boundaries, so the pattern is block-invariant; DMA'd once.
        rows = jnp.arange(sub_rows, dtype=jnp.int32)[:, None]
        cols = jnp.arange(lane, dtype=jnp.int32)[None, :]
        hmask = (((rows * k + cols // w) % h) != 0).astype(jnp.float32)

        kernel = functools.partial(_tv_kernel_folded, w=w,
                                   total_rows=total_rows, ragged=ragged)
        parts = pl.pallas_call(
            kernel,
            grid=(num_blocks,),
            in_specs=[
                pl.BlockSpec((sub_rows, lane), lambda i: (i, 0)),
                pl.BlockSpec((sub_rows, lane), lambda i: (0, 0)),  # resident mask
            ],
            out_specs=pl.BlockSpec((1, 1, 128), lambda i: (i, 0, 0)),
            out_shape=jax.ShapeDtypeStruct((num_blocks, 1, 128), jnp.float32),
            compiler_params=common_params,
        )(x2d, hmask)

        h_tv = jnp.sum(parts[:, 0, 0])
        w_tv = jnp.sum(parts[:, 0, 1])
    else:
        # ---------------- row-tiled path (no folding) -----------------------
        total_rows = n * h
        row_bytes = max(1, w * 4)
        max_rows = max(8, ((target_block_bytes // row_bytes) // 8) * 8)
        if total_rows <= max_rows:
            sub_rows, num_blocks = total_rows, 1
        else:
            sub_rows = max_rows
            num_blocks = -(-total_rows // sub_rows)
        ragged = num_blocks * sub_rows > total_rows

        x2d = x.reshape(total_rows, w)              # free row-major reshape

        kernel = functools.partial(_tv_kernel_rows, h=h,
                                   total_rows=total_rows, ragged=ragged)
        parts = pl.pallas_call(
            kernel,
            grid=(num_blocks,),
            in_specs=[pl.BlockSpec((sub_rows, w), lambda i: (i, 0))],
            out_specs=pl.BlockSpec((1, 1, 128), lambda i: (i, 0, 0)),
            out_shape=jax.ShapeDtypeStruct((num_blocks, 1, 128), jnp.float32),
            compiler_params=common_params,
        )(x2d)

        h_tv = jnp.sum(parts[:, 0, 0])
        w_tv = jnp.sum(parts[:, 0, 1])

        # Seam correction: H differences across row-tile boundaries that fall
        # inside a plane were masked in-kernel; add them back (a handful of
        # rows -> negligible traffic, and no full-tensor pad/copy anywhere).
        seam_rows = [r for r in range(sub_rows, num_blocks * sub_rows, sub_rows)
                     if (r % h != 0) and (r < total_rows)]
        if seam_rows:
            idx = jnp.asarray(seam_rows, dtype=jnp.int32)
            cur = jnp.take(x2d, idx, axis=0).astype(jnp.float32)
            prev = jnp.take(x2d, idx - 1, axis=0).astype(jnp.float32)
            h_tv = h_tv + jnp.sum((cur - prev) ** 2)

    return tv_loss_weight * 2.0 * (h_tv / count_h + w_tv / count_w) / b


def _reference_l_tv(x, tv_loss_weight=1.0):
    """Pure-JAX reference for correctness checking."""
    b, c, h, w = x.shape
    count_h = (h - 1) * w
    count_w = h * (w - 1)
    xf = x.astype(jnp.float32)
    h_tv = jnp.sum((xf[:, :, 1:, :] - xf[:, :, :-1, :]) ** 2)
    w_tv = jnp.sum((xf[:, :, :, 1:] - xf[:, :, :, :-1]) ** 2)
    return tv_loss_weight * 2.0 * (h_tv / count_h + w_tv / count_w) / b


if __name__ == "__main__":
    key = jax.random.PRNGKey(0)

    # (shape, target_block_bytes) cases: the primary small NCHW input plus two
    # tiny configs that exercise the multi-block/ragged folded path and the
    # row-tiled path with seams.
    cases = [
        ((2, 4, 16, 16), _TARGET_BLOCK_BYTES),   # folded, single block (primary)
        ((2, 3, 16, 16), 4 * 1024),              # folded, multi-block + ragged
        ((1, 2, 10, 128), 4 * 1024),             # row-tiled, seams + ragged
    ]
    for i, (shape, tgt) in enumerate(cases):
        key, sub = jax.random.split(key)
        x = jax.random.normal(sub, shape, dtype=jnp.float32)
        loss = jax.block_until_ready(
            l_tv_loss(x, tv_loss_weight=1.0, target_block_bytes=tgt))
        ref = jax.block_until_ready(_reference_l_tv(x, tv_loss_weight=1.0))
        assert jnp.allclose(loss, ref, rtol=1e-5, atol=1e-5), (i, shape, loss, ref)

    print("KERNEL_OK")
</pallas_src>

<mosaic_0001>
module attributes {stable_mosaic.version = 11 : i64} {
  func.func @_tv_kernel_folded(%arg0: i32, %arg1: memref<16x128xf32, #tpu.memory_space<vmem>>, %arg2: memref<16x128xf32, #tpu.memory_space<vmem>>, %arg3: memref<1x1x128xf32, #tpu.memory_space<vmem>>) attributes {dimension_semantics = [#tpu.dimension_semantics<parallel>], iteration_bounds = array<i64: 1>, scalar_prefetch = 0 : i64, scratch_operands = 0 : i64, tpu.core_type = #tpu.core_type<tc>, window_params = [{transform_indices = @transform_0, window_bounds = array<i64: 16, 128>}, {pipeline_mode = #tpu.pipeline_mode<synchronous>, transform_indices = @transform_1, window_bounds = array<i64: 16, 128>}, {transform_indices = @transform_2, window_bounds = array<i64: 1, 1, 128>}]} {
    %c0 = arith.constant 0 : index
    %c0_0 = arith.constant 0 : index
    %0 = vector.load %arg1[%c0, %c0_0] : memref<16x128xf32, #tpu.memory_space<vmem>>, vector<16x128xf32>
    %1 = tpu.iota {dimensions = array<i32: 1>} : vector<1x128xi32>
    %c16_i32 = arith.constant 16 : i32
    %c0_i32 = arith.constant 0 : i32
    %2 = arith.cmpi eq, %c16_i32, %c0_i32 : i32
    %c1_i32 = arith.constant 1 : i32
    %3 = arith.select %2, %c1_i32, %c16_i32 : i32
    %4 = vector.broadcast %3 : i32 to vector<1x128xi32>
    %5 = arith.remsi %1, %4 : vector<1x128xi32>
    %c0_i32_1 = arith.constant 0 : i32
    %6 = vector.broadcast %c0_i32_1 : i32 to vector<1x128xi32>
    %7 = arith.cmpi ne, %5, %6 : vector<1x128xi32>
    %c0_i32_2 = arith.constant 0 : i32
    %8 = vector.broadcast %c0_i32_2 : i32 to vector<1x128xi32>
    %9 = arith.cmpi slt, %5, %8 : vector<1x128xi32>
    %c0_i32_3 = arith.constant 0 : i32
    %10 = arith.cmpi slt, %3, %c0_i32_3 : i32
    %11 = vector.broadcast %10 : i1 to vector<1x128xi1>
    %12 = vector.broadcast %11 : vector<1x128xi1> to vector<1x128xi1>
    %13 = arith.xori %9, %12 : vector<1x128xi1>
    %14 = arith.andi %13, %7 : vector<1x128xi1>
    %15 = vector.broadcast %3 : i32 to vector<1x128xi32>
    %16 = arith.addi %5, %15 : vector<1x128xi32>
    %17 = arith.select %14, %16, %5 : vector<1x128xi1>, vector<1x128xi32>
    %c0_i32_4 = arith.constant 0 : i32
    %18 = vector.broadcast %c0_i32_4 : i32 to vector<1x128xi32>
    %19 = arith.cmpi ne, %17, %18 : vector<1x128xi32>
    %20 = arith.extui %19 : vector<1x128xi1> to vector<1x128xi32>
    %21 = arith.sitofp %20 : vector<1x128xi32> to vector<1x128xf32>
    %c16_i32_5 = arith.constant 16 : i32
    %22 = vector.broadcast %c16_i32_5 : i32 to vector<1x128xi32>
    %23 = arith.cmpi sge, %1, %22 : vector<1x128xi32>
    %c1_i32_6 = arith.constant 1 : i32
    %24 = tpu.dynamic_rotate %0 by %c1_i32_6 dim 1 : vector<16x128xf32>, i32 -> vector<16x128xf32>
    %25 = arith.subf %0, %24 : vector<16x128xf32>
    %26 = vector.broadcast %21 : vector<1x128xf32> to vector<16x128xf32>
    %27 = arith.mulf %25, %26 : vector<16x128xf32>
    %c16_i32_7 = arith.constant 16 : i32
    %28 = tpu.dynamic_rotate %0 by %c16_i32_7 dim 1 : vector<16x128xf32>, i32 -> vector<16x128xf32>
    %c1_i32_8 = arith.constant 1 : i32
    %29 = tpu.dynamic_rotate %28 by %c1_i32_8 dim 0 : vector<16x128xf32>, i32 -> vector<16x128xf32>
    %30 = vector.shape_cast %23 : vector<1x128xi1> to vector<1x128xi1>
    %31 = vector.broadcast %30 : vector<1x128xi1> to vector<16x128xi1>
    %32 = arith.select %31, %28, %29 : vector<16x128xi1>, vector<16x128xf32>
    %33 = arith.subf %0, %32 : vector<16x128xf32>
    %c0_9 = arith.constant 0 : index
    %c0_10 = arith.constant 0 : index
    %34 = vector.load %arg2[%c0_9, %c0_10] : memref<16x128xf32, #tpu.memory_space<vmem>>, vector<16x128xf32>
    %35 = arith.mulf %33, %34 : vector<16x128xf32>
    %36 = arith.mulf %35, %35 : vector<16x128xf32>
    %37 = vector.shape_cast %36 : vector<16x128xf32> to vector<1x16x128xf32>
    %cst = arith.constant dense<0.000000e+00> : vector<1xf32>
    %38 = vector.multi_reduction <add>, %37, %cst [1, 2] : vector<1x16x128xf32> to vector<1xf32>
    %39 = vector.shape_cast %38 : vector<1xf32> to vector<1x1x1xf32>
    %40 = vector.extract %39[0, 0, 0] : f32 from vector<1x1x1xf32>
    %41 = arith.mulf %27, %27 : vector<16x128xf32>
    %42 = vector.shape_cast %41 : vector<16x128xf32> to vector<1x16x128xf32>
    %cst_11 = arith.constant dense<0.000000e+00> : vector<1xf32>
    %43 = vector.multi_reduction <add>, %42, %cst_11 [1, 2] : vector<1x16x128xf32> to vector<1xf32>
    %44 = vector.shape_cast %43 : vector<1xf32> to vector<1x1x1xf32>
    %45 = vector.extract %44[0, 0, 0] : f32 from vector<1x1x1xf32>
    %46 = tpu.iota {dimensions = array<i32: 1>} : vector<1x128xi32>
    %c0_i32_12 = arith.constant 0 : i32
    %47 = vector.broadcast %c0_i32_12 : i32 to vector<1x128xi32>
    %48 = arith.cmpi eq, %46, %47 : vector<1x128xi32>
    %c1_i32_13 = arith.constant 1 : i32
    %49 = vector.broadcast %c1_i32_13 : i32 to vector<1x128xi32>
    %50 = arith.cmpi eq, %46, %49 : vector<1x128xi32>
    %cst_14 = arith.constant 0.000000e+00 : f32
    %51 = vector.broadcast %45 : f32 to vector<1x128xf32>
    %52 = vector.broadcast %cst_14 : f32 to vector<1x128xf32>
    %53 = arith.select %50, %51, %52 : vector<1x128xi1>, vector<1x128xf32>
    %54 = vector.broadcast %40 : f32 to vector<1x128xf32>
    %55 = arith.select %48, %54, %53 : vector<1x128xi1>, vector<1x128xf32>
    %56 = vector.shape_cast %55 : vector<1x128xf32> to vector<1x1x128xf32>
    %c0_15 = arith.constant 0 : index
    %c0_16 = arith.constant 0 : index
    %c0_17 = arith.constant 0 : index
    %57 = vector.load %arg3[%c0_15, %c0_16, %c0_17] : memref<1x1x128xf32, #tpu.memory_space<vmem>>, vector<1x1x128xf32>
    tpu.vector_store %arg3[%c0_15, %c0_16, %c0_17], %56 {strides = array<i32>} : memref<1x1x128xf32, #tpu.memory_space<vmem>>, vector<1x1x128xf32>,
    return
  }
  func.func @transform_0(%arg0: i32) -> (i32, i32) {
    %c0_i32 = arith.constant 0 : i32
    %c0_i32_0 = arith.constant 0 : i32
    return %arg0, %c0_i32 : i32, i32
  }
  func.func @transform_1(%arg0: i32) -> (i32, i32) {
    %c0_i32 = arith.constant 0 : i32
    %c0_i32_0 = arith.constant 0 : i32
    %c0_i32_1 = arith.constant 0 : i32
    return %c0_i32, %c0_i32_0 : i32, i32
  }
  func.func @transform_2(%arg0: i32) -> (i32, i32, i32) {
    %c0_i32 = arith.constant 0 : i32
    %c0_i32_0 = arith.constant 0 : i32
    %c0_i32_1 = arith.constant 0 : i32
    return %arg0, %c0_i32, %c0_i32_0 : i32, i32, i32
  }
}

</mosaic_0001>

<bundles_post_ra>
// kernel: tpu_custom_call.1
= control target key start
LH: loop header
LB: loop body
LE: loop exit
PB: predicated region body
PF: predicated region fallthrough
CT: control target
= control target key end

     0   :  { %7 = vsyncpa [#allocation3], 0  ;;  %s286_s0 = inlined_call_operand.hbm [shape: f32[16,128], index: 0, kind: input, shape index: {}]   ;;  %s287_s1 = inlined_call_operand.hbm [shape: f32[16,128], index: 1, kind: input, shape index: {}]   ;;  %s288_s2 = inlined_call_operand.hbm [shape: f32[1,1,128], index: 2, kind: output, shape index: {}]  }
   0x1   :  { %8 = vsyncpa [#allocation6], 0 }
   0x2   :  { %9 = vsyncpa [#allocation4], 0  ;;  %s221_s9 = smov [#allocation2]   ;;  %s149_s13 = scalar_lea.hbm %s286_s0, 256 }
   0x3   :  { %s15_s10 = sshll.u32 %s221_s9, 4  ;;  %p150_p0 = scmp.ne.s32.totalorder %s286_s0, %s149_s13  ;;  %s16_s10 = int_to_ptr.vmem [resolvable:$true] %s15_s10 }
   0x4   :  { %p153_p1 = scmp.lt.u32.totalorder %s149_s13, %s286_s0 }
   0x6   :  { %p155_p2 = pnand %p153_p1, %p150_p0 }
   0x8   :  { %158 = shalt.err (!%p155_p2)
}
   0x9   :  { %s159_s18 = scalar_lea.vmem %s16_s10, 256  ;;  %p164_p4 = scmp.lt.s32.totalorder %s16_s10, %s16_s10 }
   0xa   :  { %p160_p3 = scmp.ne.s32.totalorder %s16_s10, %s159_s18  ;;  %p165_p5 = scmp.lt.s32.totalorder %s159_s18, %s159_s18 }
   0xc   :  { %p166_p6 = por %p165_p5, %p164_p4 }
   0xe   :  { %p167_p7 = pnand %p166_p6, %p160_p3 }
  0x10   :  { %170 = shalt.err (!%p167_p7)
}
  0x11   :  { %s222_s19 = smov 128   ;;  %s223_s20 = smov 8  }
  0x12   :  { %21 = dma.hbm_to_vmem [thread:$0]  %s286_s0, 256, %s16_s10, [#allocation3], %s222_s19, %s222_s19, %s223_s20  }
  0x13   :  { %s224_s23 = smov [#allocation5]   ;;  %s171_s27 = scalar_lea.hbm %s287_s1, 256 }
  0x14   :  { %s27_s24 = sshll.u32 %s224_s23, 4  ;;  %p172_p8 = scmp.ne.s32.totalorder %s287_s1, %s171_s27  ;;  %s28_s24 = int_to_ptr.vmem [resolvable:$true] %s27_s24 }
  0x15   :  { %p175_p9 = scmp.lt.u32.totalorder %s171_s27, %s287_s1 }
  0x17   :  { %p177_p10 = pnand %p175_p9, %p172_p8 }
  0x19   :  { %180 = shalt.err (!%p177_p10)
}
  0x1a   :  { %s181_s4 = scalar_lea.vmem %s28_s24, 256  ;;  %p186_p12 = scmp.lt.s32.totalorder %s28_s24, %s28_s24 }
  0x1b   :  { %p182_p11 = scmp.ne.s32.totalorder %s28_s24, %s181_s4  ;;  %p187_p13 = scmp.lt.s32.totalorder %s181_s4, %s181_s4 }
  0x1d   :  { %p188_p0 = por %p187_p13, %p186_p12 }
  0x1f   :  { %p189_p1 = pnand %p188_p0, %p182_p11 }
  0x21   :  { %192 = shalt.err (!%p189_p1)
}
  0x22   :  { %33 = dma.hbm_to_vmem [thread:$0]  %s287_s1, 256, %s28_s24, [#allocation6], %s222_s19, %s222_s19, %s223_s20  }
  0x23   :  { %215 = dma.done.wait [#allocation3], 256  }
  0x24   :  { %216 = vsyncadd [#allocation3], 4294967040 }
  0x25   :  { %217 = dma.done.wait [#allocation6], 256  }
  0x26   :  { %218 = vsyncadd [#allocation6], 4294967040  ;;  %v40_v0 = vld [vmem:[#allocation2] sm:$0xff]  ;;  %s225_s6 = smov 1   ;;  %s226_s7 = smov 16   ;;  %v41_v1 = vld [vmem:[#allocation2 + $0x8] sm:$0xff]  ;;  %v42_v2 = vlaneseq }
  0x27   :  { %60 = vrot.lane.b32.xlu1 %v40_v0, %s225_s6  ;;  %68 = vrot.lane.b32.xlu0 %v40_v0, %s226_s7  ;;  %v227_v5 = vmov 0.0   ;;  %v85_v23 = vld [vmem:[#allocation5] sm:$0xff]  ;;  %v86_v24 = vld [vmem:[#allocation5 + $0x8] sm:$0xff]  ;;  %s228_s8 = smov [#allocation7]  }
  0x28   :  { %v268_v3 = vand.u32 127, %v42_v2  ;;  %v75_v9 = vshrl.u32 %v42_v2, 7  ;;  %s126_s9 = sshll.u32 %s228_s8, 4  ;;  %s127_s9 = int_to_ptr.vmem [resolvable:$true] %s126_s9 }
  0x29   :  { %s193_s11 = scalar_lea.vmem %s127_s9, 16  ;;  %s197_s12 = scalar_lea.vmem %s127_s9, 32 }
  0x2a   :  { %v48_v4 = vand.u32 15, %v268_v3  ;;  %vm76_vm1 = vcmp.lt.s32.totalorder %v75_v9, 1  ;;  %vm59_vm2 = vcmp.ge.s32.totalorder %v268_v3, 16  ;;  %vm114_vm3 = vcmp.eq.s32.totalorder %v268_v3, 1  ;;  %p194_p2 = scmp.ne.s32.totalorder %s127_s9, %s193_s11  ;;  %p198_p3 = scmp.lt.s32.totalorder %s127_s9, %s127_s9 }
  0x2b   :  { %62 = vrot.lane.b32.xlu1 %v41_v1, %s225_s6  ;;  %70 = vrot.lane.b32.xlu0 %v41_v1, %s226_s7  ;;  %vm113_vm4 = vcmp.eq.s32.totalorder %v268_v3, 0  ;;  %p199_p4 = scmp.lt.s32.totalorder %s197_s12, %s193_s11 }
  0x2c   :  { %vm56_vm0 = vcmp.ne.s32.totalorder %v48_v4, 0 }
  0x2d   :  { %v136_v6 = vsel %vm56_vm0, 1.0, %v227_v5  ;;  %p200_p5 = por %p199_p4, %p198_p3 }
  0x2f   :  { %p201_p6 = pnand %p200_p5, %p194_p2 }
  0x99   :  { %v61_v7 = vpop.permute.xlu1 %60  ;;  %v69_v8 = vpop.permute.xlu0 %68 }
  0x9a   :  { %v64_v10 = vsub.f32 %v40_v0, %v61_v7  ;;  %v72_v14 = vrot.slane %v69_v8, 7 }
  0x9c   :  { %v66_v11 = vmul.f32 %v136_v6, %v64_v10 }
  0x9d   :  { %v63_v12 = vpop.permute.xlu1 %62  ;;  %v71_v13 = vpop.permute.xlu0 %70 }
  0x9e   :  { %v65_v15 = vsub.f32 %v41_v1, %v63_v12  ;;  %v73_v16 = vrot.slane %v71_v13, 7  ;;  %v101_v17 = vmul.f32 %v66_v11, %v66_v11 }
  0xa0   :  { %v67_v18 = vmul.f32 %v136_v6, %v65_v15  ;;  %v77_v19 = vsel %vm76_vm1, %v72_v14, %v73_v16  ;;  %v78_v20 = vsel %vm76_vm1, %v73_v16, %v72_v14 }
  0xa1   :  { %v81_v21 = vsel %vm59_vm2, %v69_v8, %v78_v20  ;;  %v82_v22 = vsel %vm59_vm2, %v71_v13, %v77_v19 }
  0xa2   :  { %v102_v25 = vmul.f32 %v67_v18, %v67_v18  ;;  %v84_v26 = vsub.f32 %v41_v1, %v82_v22  ;;  %v83_v27 = vsub.f32 %v40_v0, %v81_v21 }
  0xa4   :  { %v103_v28 = vadd.f32 %v102_v25, %v101_v17  ;;  %v87_v29 = vmul.f32 %v85_v23, %v83_v27  ;;  %v88_v30 = vmul.f32 %v86_v24, %v84_v26 }
  0xa6   :  { %104 = vadd.xlane.f32.xlu1 %v103_v28  ;;  %v89_v31 = vmul.f32 %v87_v29, %v87_v29  ;;  %v90_v32 = vmul.f32 %v88_v30, %v88_v30 }
  0xa8   :  { %v91_v33 = vadd.f32 %v90_v32, %v89_v31 }
  0xaa   :  { %92 = vadd.xlane.f32.xlu0 %v91_v33 }
 0x133   :  { %v105_v34 = vpop.xlane.xlu1 %104 }
 0x134   :  { %v106_v35 = vrot.slane %v105_v34, 4 }
 0x136   :  { %v107_v36 = vadd.f32 %v106_v35, %v105_v34 }
 0x137   :  { %v93_v37 = vpop.xlane.xlu0 %92 }
 0x138   :  { %v108_v38 = vrot.slane %v107_v36, 2  ;;  %v94_v39 = vrot.slane %v93_v37, 4 }
 0x13a   :  { %v95_v40 = vadd.f32 %v94_v39, %v93_v37  ;;  %v109_v41 = vadd.f32 %v108_v38, %v107_v36 }
 0x13c   :  { %v96_v42 = vrot.slane %v95_v40, 2  ;;  %v110_v44 = vrot.slane %v109_v41, 1 }
 0x13e   :  { %v97_v43 = vadd.f32 %v96_v42, %v95_v40  ;;  %v111_v47 = vadd.f32 %v110_v44, %v109_v41 }
 0x140   :  { %v98_v45 = vrot.slane %v97_v43, 1 }
 0x142   :  { %v99_v46 = vadd.f32 %v98_v45, %v97_v43 }
 0x144   :  { %137 = vpush %v99_v46 }
 0x145   :  { %139 = vpush %v111_v47 }
 0x175   :  { %s138_s1 = spop %137 }
 0x176   :  { %v117_v48 = vstv %s138_s1  ;;  %s140_s10 = spop %139 }
 0x177   :  { %v115_v49 = vstv %s140_s10 }
 0x178   :  { %v116_v50 = vsel %vm114_vm3, %v115_v49, 0.0 }
 0x179   :  { %v118_v51 = vsel %vm113_vm4, %v117_v48, %v116_v50 }
 0x17a   :  { %119 = vst [vmem:[#allocation7] sm:$0x1] %v118_v51 }
 0x17b   :  { %204 = shalt.err (!%p201_p6)
}
 0x17c   :  { %s205_s15 = scalar_lea.hbm %s288_s2, 16 }
 0x17d   :  { %p206_p7 = scmp.ne.s32.totalorder %s288_s2, %s205_s15  ;;  %p209_p8 = scmp.lt.u32.totalorder %s205_s15, %s288_s2 }
 0x17f   :  { %p211_p9 = pnand %p209_p8, %p206_p7 }
 0x181   :  { %214 = shalt.err (!%p211_p9)
}
 0x182   :  { %129 = dma.vmem_to_hbm [thread:$0]  %s127_s9, 16, %s288_s2, [#allocation4]  }
 0x183   :  { %219 = dma.done.wait [#allocation4], 16  }
 0x184   :  { %220 = vsyncadd [#allocation4], 4294967280 }
 0x185   :  { %133 = vsyncpa [#allocation3], 1 }
 0x186   :  { %134 = vsyncpa [#allocation6], 1 }
 0x187   :  { %135 = vsyncpa [#allocation4], 1 }

</bundles_post_ra>
